<compile_context>
chip_gen: v6e
topology: v6e:2x2x1
jax: 0.10.0
libtpu: 0.0.40
codegen_flags: <defaults>
</compile_context>

<pallas_src>
import jax
import jax.numpy as jnp
from jax.experimental import pallas as pl
from jax.experimental.pallas import tpu as pltpu


def _copy_kernel(x_ref, o_ref):
    # Single vld/vst pair on the flattened contiguous data; no in-kernel
    # reshape, so no cross-lane/sublane relayout is ever materialized.
    o_ref[...] = x_ref[...]


def view_two_five_three(a: jax.Array) -> jax.Array:
    """Equivalent of `a.view(2, 5, 3)` for a contiguous `a` of shape (3, 5, 2)."""
    assert a.shape == (3, 5, 2), a.shape
    assert a.dtype == jnp.float32, a.dtype

    # Metadata-only flatten to one dense (lane-major) row, same memory order
    # as the contiguous PyTorch tensor. No data movement happens here.
    flat = jnp.reshape(a, (1, 30))

    out_flat = pl.pallas_call(
        _copy_kernel,
        out_shape=jax.ShapeDtypeStruct((1, 30), a.dtype),
        # Grid-less: a 1-step pipeline is pure prologue/epilogue overhead for
        # 120 bytes, so load/store the whole array as a single VMEM block.
        in_specs=[pl.BlockSpec(memory_space=pltpu.MemorySpace.VMEM)],
        out_specs=pl.BlockSpec(memory_space=pltpu.MemorySpace.VMEM),
        # Hint the scheduler that this custom call is essentially free.
        cost_estimate=pl.CostEstimate(flops=0, transcendentals=0,
                                      bytes_accessed=240),
        # NOTE: no input_output_aliases — `a` stays live at the call site, so
        # donating it would only trigger a hidden defensive copy.
    )(flat)

    # The view itself (2, 5, 3) is a free, memory-order-preserving reshape.
    return jnp.reshape(out_flat, (2, 5, 3))


if __name__ == "__main__":
    key = jax.random.PRNGKey(0)
    # Static annotated shape [3, 5, 2] float32.
    a = jax.random.normal(key, (3, 5, 2), dtype=jnp.float32)

    out = view_two_five_three(a)
    out = jax.block_until_ready(out)

    ref = jnp.reshape(a, (2, 5, 3))
    assert out.shape == (2, 5, 3), out.shape
    assert out.dtype == jnp.float32, out.dtype
    assert jnp.array_equal(out, ref), "kernel output mismatch vs reference reshape"

    print("KERNEL_OK")
</pallas_src>

<mosaic_0001>
module attributes {stable_mosaic.version = 11 : i64} {
  func.func @_copy_kernel(%arg0: memref<1x30xf32, #tpu.memory_space<vmem>>, %arg1: memref<1x30xf32, #tpu.memory_space<vmem>>) attributes {dimension_semantics = [], scalar_prefetch = 0 : i64, scratch_operands = 0 : i64, tpu.core_type = #tpu.core_type<tc>} {
    %c0 = arith.constant 0 : index
    %c0_0 = arith.constant 0 : index
    %0 = vector.load %arg0[%c0, %c0_0] : memref<1x30xf32, #tpu.memory_space<vmem>>, vector<1x30xf32>
    %c0_1 = arith.constant 0 : index
    %c0_2 = arith.constant 0 : index
    %1 = vector.load %arg1[%c0_1, %c0_2] : memref<1x30xf32, #tpu.memory_space<vmem>>, vector<1x30xf32>
    tpu.vector_store %arg1[%c0_1, %c0_2], %0 {strides = array<i32>} : memref<1x30xf32, #tpu.memory_space<vmem>>, vector<1x30xf32>,
    return
  }
}

</mosaic_0001>

<bundles_post_ra>
// kernel: tpu_custom_call.1
= control target key start
LH: loop header
LB: loop body
LE: loop exit
PB: predicated region body
PF: predicated region fallthrough
CT: control target
= control target key end

     0   :  { %6 = vsyncpa [#allocation3], 0  ;;  %s103_s0 = inlined_call_operand.hbm [shape: f32[1,30], index: 0, kind: input, shape index: {}]   ;;  %s104_s1 = inlined_call_operand.hbm [shape: f32[1,30], index: 1, kind: output, shape index: {}]  }
   0x1   :  { %7 = vsyncpa [#allocation4], 0  ;;  %s85_s6 = smov [#allocation2]  }
   0x2   :  { %s14_s7 = sshll.u32 %s85_s6, 4  ;;  %s15_s7 = int_to_ptr.vmem [resolvable:$true] %s14_s7 }
   0x3   :  { %s49_s8 = scalar_lea.vmem %s15_s7, 16  ;;  %s53_s9 = scalar_lea.vmem %s15_s7, 32 }
   0x4   :  { %p50_p0 = scmp.ne.s32.totalorder %s15_s7, %s49_s8  ;;  %p54_p1 = scmp.lt.s32.totalorder %s15_s7, %s15_s7 }
   0x5   :  { %p55_p2 = scmp.lt.s32.totalorder %s53_s9, %s49_s8 }
   0x7   :  { %p56_p3 = por %p55_p2, %p54_p1 }
   0x9   :  { %p57_p4 = pnand %p56_p3, %p50_p0 }
   0xb   :  { %60 = shalt.err (!%p57_p4)
}
   0xc   :  { %17 = dma.hbm_to_vmem [thread:$0]  %s103_s0, 16, %s15_s7, [#allocation3]  }
   0xd   :  { %81 = dma.done.wait [#allocation3], 16  }
   0xe   :  { %82 = vsyncadd [#allocation3], 4294967280  ;;  %s86_s12 = smov [#allocation5]   ;;  %vm22_vm0 = vcmask 237568   ;;  %v21_v0 = vld [vmem:[#allocation2] sm:$0x1] }
   0xf   :  { %s30_s13 = sshll.u32 %s86_s12, 4  ;;  %23 = vst.msk [vmem:[#allocation5] sm:$0x1] %vm22_vm0, %v21_v0  ;;  %s31_s13 = int_to_ptr.vmem [resolvable:$true] %s30_s13 }
  0x10   :  { %s61_s14 = scalar_lea.vmem %s31_s13, 16  ;;  %s65_s15 = scalar_lea.vmem %s31_s13, 32 }
  0x11   :  { %p62_p5 = scmp.ne.s32.totalorder %s31_s13, %s61_s14  ;;  %p66_p6 = scmp.lt.s32.totalorder %s31_s13, %s31_s13 }
  0x12   :  { %p67_p7 = scmp.lt.s32.totalorder %s65_s15, %s61_s14 }
  0x14   :  { %p68_p8 = por %p67_p7, %p66_p6 }
  0x16   :  { %p69_p9 = pnand %p68_p8, %p62_p5 }
  0x18   :  { %72 = shalt.err (!%p69_p9)
}
  0x19   :  { %33 = dma.vmem_to_hbm [thread:$0]  %s31_s13, 16, %s104_s1, [#allocation4]  }
  0x1a   :  { %83 = dma.done.wait [#allocation4], 16  }
  0x1b   :  { %84 = vsyncadd [#allocation4], 4294967280 }
  0x1c   :  { %37 = vsyncpa [#allocation3], 1 }
  0x1d   :  { %38 = vsyncpa [#allocation4], 1 }

</bundles_post_ra>
